<compile_context>
chip_gen: v6e
topology: v6e:2x2x1
jax: 0.10.0
libtpu: 0.0.40
codegen_flags: <defaults>
</compile_context>

<pallas_src>
import jax
import jax.numpy as jnp
from jax.experimental import pallas as pl
from jax.experimental.pallas import tpu as pltpu


def _round_up(x, m):
    return ((x + m - 1) // m) * m


def _vmem_budget_bytes():
    """Per-TensorCore VMEM budget used for tile selection and vmem_limit."""
    try:
        kind = jax.devices()[0].device_kind.lower()
    except Exception:
        kind = ""
    if ("v2" in kind) or ("v3" in kind):
        return 12 * 1024 * 1024
    if ("v4" in kind) or ("v5" in kind) or ("v6" in kind):
        return 96 * 1024 * 1024      # 128 MiB physical VMEM per core
    return 48 * 1024 * 1024          # v7x: 64 MiB per TensorCore; unknown: safe


def _pick_row_tile(n, fi, fo, budget):
    """Pick (tm, Np): A row-strip height and padded node count for this device."""
    f_res = min(fi, fo)      # resident operand width after the fusion-order choice
    f_wide = max(fi, fo)     # widest output strip the pipeline double-buffers
    for tm in (512, 256, 128):
        n_p = _round_up(n, tm)
        tiles = n_p // tm
        need = (2 * tm * n_p * 2       # A row strip, bf16, double-buffered
                + n_p * f_res * 2      # resident XW / X, bf16, single copy
                + 2 * tm * f_wide * 4)  # output strip, f32, double-buffered
        if need > budget:
            continue
        if tm > 128 and tiles < 8:
            # Keep >= 8 row strips (>= 4 per v7x TensorCore) so the pipeline
            # has a steady state and both cores stay busy.
            continue
        return tm, n_p
    return 128, _round_up(n, 128)


# ----------------------------------------------------------------------------
# Kernels
# ----------------------------------------------------------------------------
def _mm_resident_rhs_kernel(lhs_ref, rhs_ref, o_ref):
    # One MXU matmul per row strip: (tm, K) @ (K, N) -> (tm, N).
    # rhs_ref is the whole (K, N) operand, kept resident in VMEM (one copy,
    # never re-DMA'd across grid steps).  Output store is lane-dense (N % 128
    # == 0) and cast happens at the store (no separate astype pass).
    o_ref[...] = jnp.dot(
        lhs_ref[...], rhs_ref[...], preferred_element_type=jnp.float32
    ).astype(o_ref.dtype)


def _mm_ktiled_kernel(lhs_ref, rhs_ref, o_ref, acc_ref):
    # Fallback for operands too large to keep resident in VMEM: reduce over a
    # trailing "arbitrary" K grid axis into an f32 scratch accumulator.
    @pl.when(pl.program_id(1) == 0)
    def _():
        acc_ref[...] = jnp.zeros_like(acc_ref)

    acc_ref[...] += jnp.dot(
        lhs_ref[...], rhs_ref[...], preferred_element_type=jnp.float32
    )
    o_ref[...] = acc_ref[...].astype(o_ref.dtype)


# ----------------------------------------------------------------------------
# Row-tiled matmul wrapper (resident-RHS fast path + K-tiled fallback)
# ----------------------------------------------------------------------------
def _matmul_rowtiles(lhs, rhs, out_dtype, tm, *, force_k_tile=None):
    """out = lhs @ rhs with lhs tiled over rows.  All dims pre-padded to 128."""
    M, K = lhs.shape
    K2, Ncols = rhs.shape
    assert K2 == K and M % tm == 0 and K % 128 == 0 and Ncols % 128 == 0

    budget = _vmem_budget_bytes()
    out_isz = jnp.dtype(out_dtype).itemsize
    resident_need = (K * Ncols * rhs.dtype.itemsize       # whole RHS, 1 copy
                     + 2 * tm * K * lhs.dtype.itemsize    # LHS strip, dbl-buf
                     + 2 * tm * Ncols * out_isz)          # out strip, dbl-buf

    if force_k_tile is None and resident_need <= budget:
        flops = 2 * M * K * Ncols
        bytes_accessed = (lhs.size * lhs.dtype.itemsize
                          + rhs.size * rhs.dtype.itemsize
                          + M * Ncols * out_isz)
        return pl.pallas_call(
            _mm_resident_rhs_kernel,
            out_shape=jax.ShapeDtypeStruct((M, Ncols), out_dtype),
            grid_spec=pltpu.PrefetchScalarGridSpec(
                num_scalar_prefetch=0,
                grid=(M // tm,),
                in_specs=[
                    pl.BlockSpec((tm, K), lambda i: (i, 0)),   # LHS row strip
                    # Whole RHS placed in VMEM once (single resident copy; no
                    # per-step pipeline buffers for a constant operand).
                    pl.BlockSpec(memory_space=pltpu.MemorySpace.VMEM),
                ],
                out_specs=pl.BlockSpec((tm, Ncols), lambda i: (i, 0)),
            ),
            compiler_params=pltpu.CompilerParams(
                dimension_semantics=("parallel",),   # row strips shard across TCs
                vmem_limit_bytes=budget,
            ),
            cost_estimate=pl.CostEstimate(
                flops=flops, transcendentals=0, bytes_accessed=bytes_accessed),
        )(lhs, rhs)

    # --- K-tiled fallback (large graphs / forced for testing) ---------------
    if force_k_tile is not None:
        kt = force_k_tile
    else:
        kt = 128
        for cand in (2048, 1024, 512, 256, 128):
            if K % cand:
                continue
            need = (2 * tm * cand * lhs.dtype.itemsize
                    + 2 * cand * Ncols * rhs.dtype.itemsize
                    + tm * Ncols * 4
                    + 2 * tm * Ncols * out_isz)
            if need <= budget:
                kt = cand
                break
    assert K % kt == 0
    flops = 2 * M * K * Ncols
    bytes_accessed = (lhs.size * lhs.dtype.itemsize
                      + (M // tm) * rhs.size * rhs.dtype.itemsize
                      + M * Ncols * out_isz)
    return pl.pallas_call(
        _mm_ktiled_kernel,
        out_shape=jax.ShapeDtypeStruct((M, Ncols), out_dtype),
        grid_spec=pltpu.PrefetchScalarGridSpec(
            num_scalar_prefetch=0,
            grid=(M // tm, K // kt),
            in_specs=[
                pl.BlockSpec((tm, kt), lambda i, k: (i, k)),
                pl.BlockSpec((kt, Ncols), lambda i, k: (k, 0)),
            ],
            out_specs=pl.BlockSpec((tm, Ncols), lambda i, k: (i, 0)),
            scratch_shapes=[pltpu.VMEM((tm, Ncols), jnp.float32)],
        ),
        compiler_params=pltpu.CompilerParams(
            dimension_semantics=("parallel", "arbitrary"),
            vmem_limit_bytes=budget,
        ),
        cost_estimate=pl.CostEstimate(
            flops=flops, transcendentals=0, bytes_accessed=bytes_accessed),
    )(lhs, rhs)


# ----------------------------------------------------------------------------
# GCN forward
# ----------------------------------------------------------------------------
def gcn_forward(a_hat_p, x, w_p, *, n, f_in, f_out, tm):
    """out[:n, :f_out] = A_hat @ (X @ W) via two row-tiled Pallas matmuls.

    a_hat_p: (Np, Np) bf16, normalized + padded once in set_A.
    w_p:     (Fi, Fo) bf16, padded once in __init__.
    x:       (n, f_in) float -- padded here (tiny vs. the N x N adjacency).
    """
    n_p = a_hat_p.shape[0]
    fi_p, fo_p = w_p.shape
    assert x.shape == (n, f_in)
    x_p = jnp.pad(x.astype(jnp.bfloat16), ((0, n_p - n), (0, fi_p - f_in)))

    if fo_p <= fi_p:
        # Flipped fusion: compute the small X@W first, then A_hat @ XW.  The
        # XW HBM round trip (Np*Fo bf16) is negligible vs. Np^2 A traffic.
        xw = _matmul_rowtiles(x_p, w_p, jnp.bfloat16, tm)        # (Np, Fo)
        out_p = _matmul_rowtiles(a_hat_p, xw, jnp.float32, tm)   # (Np, Fo)
    else:
        ax = _matmul_rowtiles(a_hat_p, x_p, jnp.bfloat16, tm)    # (Np, Fi)
        out_p = _matmul_rowtiles(ax, w_p, jnp.float32, tm)       # (Np, Fo)
    return out_p[:n, :f_out]


class GCNConv:
    """JAX/Pallas port of the PyTorch GCNConv module (out = A_hat @ X @ W)."""

    def __init__(self, A, in_channels, out_channels, *, key):
        self.in_channels = in_channels
        self.out_channels = out_channels
        self.Fi = _round_up(in_channels, 128)
        self.Fo = _round_up(out_channels, 128)
        # torch.rand -> uniform [0, 1)
        self.W = jax.random.uniform(
            key, (in_channels, out_channels), dtype=jnp.float32)
        # Pad + bf16-cast the weight ONCE (hoisted out of the forward path).
        self.W_p = jnp.pad(
            self.W, ((0, self.Fi - in_channels), (0, self.Fo - out_channels))
        ).astype(jnp.bfloat16)
        self.set_A(A)

    def set_A(self, A):
        n = A.shape[0]
        A_hat = A + jnp.eye(n, dtype=A.dtype)
        deg = jnp.sum(A_hat, axis=1)              # >= 1 thanks to the self loop
        d_inv_sqrt = 1.0 / jnp.sqrt(deg)
        # D^{-1/2} (A + I) D^{-1/2} via broadcasting (diagonal matmuls).
        self.A_hat = (A_hat * d_inv_sqrt[:, None]) * d_inv_sqrt[None, :]
        self.N = n
        budget = _vmem_budget_bytes()
        self.tm, self.Np = _pick_row_tile(n, self.Fi, self.Fo, budget)
        # Pad + bf16-cast the dominant N x N operand ONCE, outside the forward
        # path.  bf16 A_hat trades ~3 decimal digits on 1/sqrt(di*dj) entries
        # for 2x HBM BW / MXU rate; keep f32 here if very-high-degree graphs
        # need exact normalization.
        self.A_hat_p = jnp.pad(
            self.A_hat, ((0, self.Np - n), (0, self.Np - n))
        ).astype(jnp.bfloat16)

    def __call__(self, X):
        return gcn_forward(
            self.A_hat_p, X, self.W_p,
            n=self.N, f_in=self.in_channels, f_out=self.out_channels,
            tm=self.tm)


if __name__ == "__main__":
    # Deliberately non-128-multiple sizes to exercise the padding path.
    N = 200      # number of graph nodes
    F_IN = 144   # in_channels
    F_OUT = 64   # out_channels  (< F_IN -> flipped-fusion path)

    key = jax.random.PRNGKey(0)
    k_a, k_x, k_w, k_l, k_r = jax.random.split(key, 5)

    # Synthetic symmetric binary adjacency (deterministic), no self loops
    # (the module adds them itself).  Replaces the CoraGraphDataset load.
    A_rand = jax.random.bernoulli(k_a, p=0.05, shape=(N, N)).astype(jnp.float32)
    A = jnp.maximum(A_rand, A_rand.T)
    A = A * (1.0 - jnp.eye(N, dtype=jnp.float32))

    X = jax.random.uniform(k_x, (N, F_IN), dtype=jnp.float32)

    layer = GCNConv(A, F_IN, F_OUT, key=k_w)
    out = jax.block_until_ready(layer(X))
    assert out.shape == (N, F_OUT)

    # f32 reference of the same forward pass (bf16 operands => looser tol).
    ref = layer.A_hat @ (X @ layer.W)
    err = float(jnp.max(jnp.abs(out - ref)))
    assert jnp.allclose(out, ref, rtol=2e-2, atol=1e-1), err

    # Also exercise the K-tiled fallback path (used for graphs too large to
    # keep the RHS resident) on a small forced case.
    lhs = jax.random.uniform(k_l, (256, 384), dtype=jnp.float32).astype(jnp.bfloat16)
    rhs = jax.random.uniform(k_r, (384, 128), dtype=jnp.float32).astype(jnp.bfloat16)
    got = jax.block_until_ready(
        _matmul_rowtiles(lhs, rhs, jnp.float32, tm=128, force_k_tile=128))
    want = jnp.dot(lhs.astype(jnp.float32), rhs.astype(jnp.float32))
    kerr = float(jnp.max(jnp.abs(got - want)))
    assert jnp.allclose(got, want, rtol=2e-2, atol=1e-1), kerr

    # TODO(synk): for truly huge graphs a sparse (CSR / segment-sum) A_hat
    # aggregation kernel would replace the dense Np x Np matmul entirely.
    print("KERNEL_OK")
</pallas_src>

<mosaic_0001>
module attributes {stable_mosaic.version = 11 : i64} {
  func.func @_mm_resident_rhs_kernel(%arg0: i32, %arg1: memref<128x256xbf16, #tpu.memory_space<vmem>>, %arg2: memref<256x128xbf16, #tpu.memory_space<vmem>>, %arg3: memref<128x128xbf16, #tpu.memory_space<vmem>>) attributes {dimension_semantics = [#tpu.dimension_semantics<parallel>], iteration_bounds = array<i64: 2>, scalar_prefetch = 0 : i64, scratch_operands = 0 : i64, tpu.core_type = #tpu.core_type<tc>, window_params = [{transform_indices = @transform_0, window_bounds = array<i64: 128, 256>}, {pipeline_mode = #tpu.pipeline_mode<synchronous>, transform_indices = @transform_1, window_bounds = array<i64: 256, 128>}, {transform_indices = @transform_2, window_bounds = array<i64: 128, 128>}]} {
    %c0 = arith.constant 0 : index
    %c0_0 = arith.constant 0 : index
    %0 = vector.load %arg1[%c0, %c0_0] : memref<128x256xbf16, #tpu.memory_space<vmem>>, vector<128x256xbf16>
    %c0_1 = arith.constant 0 : index
    %c0_2 = arith.constant 0 : index
    %1 = vector.load %arg2[%c0_1, %c0_2] : memref<256x128xbf16, #tpu.memory_space<vmem>>, vector<256x128xbf16>
    %cst = arith.constant dense<0.000000e+00> : vector<128x128xf32>
    %2 = tpu.matmul %0, %1, %cst {dimension_numbers = #tpu.dot_dimension_numbers<[1], [0], [0], [1], [0, 0, 1, 1], [], []>} : vector<128x256xbf16>, vector<256x128xbf16>, vector<128x128xf32> -> vector<128x128xf32>
    %3 = arith.truncf %2 : vector<128x128xf32> to vector<128x128xbf16>
    %c0_3 = arith.constant 0 : index
    %c0_4 = arith.constant 0 : index
    %4 = vector.load %arg3[%c0_3, %c0_4] : memref<128x128xbf16, #tpu.memory_space<vmem>>, vector<128x128xbf16>
    tpu.vector_store %arg3[%c0_3, %c0_4], %3 {strides = array<i32>} : memref<128x128xbf16, #tpu.memory_space<vmem>>, vector<128x128xbf16>,
    return
  }
  func.func @transform_0(%arg0: i32) -> (i32, i32) {
    %c0_i32 = arith.constant 0 : i32
    %c0_i32_0 = arith.constant 0 : i32
    return %arg0, %c0_i32 : i32, i32
  }
  func.func @transform_1(%arg0: i32) -> (i32, i32) {
    %c0_i32 = arith.constant 0 : i32
    %c0_i32_0 = arith.constant 0 : i32
    %c0_i32_1 = arith.constant 0 : i32
    return %c0_i32, %c0_i32_0 : i32, i32
  }
  func.func @transform_2(%arg0: i32) -> (i32, i32) {
    %c0_i32 = arith.constant 0 : i32
    %c0_i32_0 = arith.constant 0 : i32
    return %arg0, %c0_i32 : i32, i32
  }
}

</mosaic_0001>

<bundles_post_ra>
// kernel: tpu_custom_call.1
= control target key start
LH: loop header
LB: loop body
LE: loop exit
PB: predicated region body
PF: predicated region fallthrough
CT: control target
= control target key end

     0   :  { %7 = vsyncpa [#allocation3], 0  ;;  %s1348_s0 = inlined_call_operand.hbm [shape: bf16[256,256], index: 0, kind: input, shape index: {}]   ;;  %s1349_s1 = inlined_call_operand.hbm [shape: bf16[256,128], index: 1, kind: input, shape index: {}]   ;;  %s1350_s2 = inlined_call_operand.hbm [shape: bf16[256,128], index: 2, kind: output, shape index: {}]  }
   0x1   :  { %9 = vsyncpa [#allocation3 + $0x1], 0 }
   0x2   :  { %10 = vsyncpa [#allocation6], 0 }
   0x3   :  { %11 = vsyncpa [#allocation4], 0 }
   0x4   :  { %13 = vsyncpa [#allocation4 + $0x1], 0  ;;  %s1141_s9 = smov 0   ;;  %s1143_s10 = smov 0  }
   0x5   :  { %s1145_s11 = smov 0   ;;  %s1147_s12 = smov 0  }
   0x6 LB: > { %s1162_s13 = sadd.s32 4294967295, %s1115_s12   ;;  %s679_s14 = sadd.s32 4294967294, %s1115_s12   ;;  %s1115_s12 = sphi %s1147_s12, %s1372_s12   ;;  %s1111_s11 = sphi %s1145_s11, %s1371_s11   ;;  %s1107_s10 = sphi %s1143_s10, %s1370_s10   ;;  %s1103_s9 = sphi %s1141_s9, %s1369_s9  }
   0x7   : > { %p39_p0 = scmp.ne.s32.totalorder %s1107_s10, %s1103_s9  ;;  %p1351_p1 = scmp.eq.s32.totalorder %s1162_s13, 0 }
   0x8   : > { %p90_p3 = scmp.eq.s32.totalorder %s679_s14, 1  ;;  %p680_p5 = scmp.ge.s32.totalorder %s1115_s12, 1 }
   0x9   : > { %p1171_p4 = por %p1351_p1, %p39_p0  ;;  %p97_p7 = scmp.lt.s32.totalorder %s1115_s12, 3 }
   0xa   : > { %p1176_p6 = por %p90_p3, %p39_p0  ;;  %s1117_s18 = smov [#allocation5]  }
   0xb   : > { %s1355_s15 = scalar_select %p1171_p4, 1, 0 }
   0xc   : > { %s1356_s16 = scalar_select %p1176_p6, 1, 0 }
   0xd   : > { %p1181_p8 = pnand %p680_p5, %p97_p7  ;;  %s109_s19 = sshll.u32 %s1117_s18, 4  ;;  %s110_s19 = int_to_ptr.vmem [resolvable:$true] %s109_s19 }
   0xe   : > { %s1195_s21 = sadd.s32 1, %s1115_s12   ;;  %s26_s22 = sadd.s32 1, %s1111_s11 }
   0xf   : > { %s1357_s17 = scalar_select %p1181_p8, 1, 0 }
  0x10   : > { %p898_p9 = pneg %p1181_p8  ;;  %s23_s23 = ssub.s32 %s1115_s12, %s1195_s21 }
  0x11   : > { %s1004_s24 = scalar_lea.vmem %s110_s19, 2048  ;;  %p1012_p5 = scmp.lt.s32.totalorder %s110_s19, %s110_s19 }
  0x12   : > { %p1190_p11 = pnand %p898_p9, %p1351_p1  ;;  %p1005_p13 = scmp.ne.s32.totalorder %s110_s19, %s1004_s24 }
  0x13   : > { %p1013_p7 = scmp.lt.s32.totalorder %s1004_s24, %s1004_s24 }
  0x14   : > { %p995_p12 = pneg %p1190_p11 }
  0x15   : > { %p1014_p10 = por %p1013_p7, %p1012_p5 }
  0x16   : > { %p1007_p0 = pnand %p1005_p13, %p995_p12 }
  0x18   : > { %p1008_p3 = pneg %p1007_p0 }
  0x1a   : > { %p1015_p2 = pnand %p1014_p10, %p1008_p3 }
  0x1c   : > { %1018 = shalt.err (!%p1015_p2)
}
  0x1d   : > { %s1118_s25 = smov 64   ;;  %s1119_s26 = smov 4  }
  0x1e   : > { %901 = dma.hbm_to_vmem [thread:$0]  (!%p1190_p11), %s1349_s1, 2048, %s110_s19, [#allocation6], %s1118_s25, %s1118_s25, %s1119_s26  }
  0x1f   : > { %p24_p9 = scmp.eq.s32.totalorder %s23_s23, 0  ;;  %p33_p12 = scmp.ne.s32.totalorder %s1111_s11, %s1107_s10 }
  0x20   : > { %p34_p10 = scmp.eq.s32.totalorder %s1115_s12, 0  ;;  %p911_p2 = scmp.lt.s32.totalorder %s1115_s12, 2 }
  0x21   : > { %s1212_s29 = scalar_select %p24_p9, %s1111_s11, %s26_s22  }
  0x22   : > { %p35_p13 = por %p34_p10, %p33_p12  ;;  %p1359_p0 = scmp.eq.s32.totalorder %s1162_s13, 1 }
  0x23   : > { %s123_s3 = sand.u32 1, %s1111_s11   ;;  %s745_s4 = sshll.u32 %s1115_s12, 11 }
  0x24   : > { %p1216_p3 = por %p1359_p0, %p33_p12  ;;  %s683_s5 = sshll.u32 %s123_s3, 7 }
  0x25   : > { %s1225_s8 = scalar_lea.hbm %s1348_s0, %s745_s4  ;;  %s127_s14 = scalar_lea.vmem [#allocation2], %s683_s5 }
  0x26   : > { %s1360_s30 = scalar_select %p1216_p3, 1, 0 }
  0x27   : > { %s135_s18 = sshll.u32 %s127_s14, 4  ;;  %p1227_p11 = pnand %p911_p2, %p35_p13  ;;  %s1231_s18 = int_to_ptr.vmem [resolvable:$true] %s135_s18 }
  0x28   : > { %s1233_s20 = scalar_lea.sflag [#allocation3], %s123_s3  ;;  %s1019_s22 = scalar_lea.hbm %s1225_s8, 2048 }
  0x29   : > { %p1020_p5 = scmp.ne.s32.totalorder %s1225_s8, %s1019_s22  ;;  %p1021_p7 = pneg %p1227_p11 }
  0x2a   : > { %s1024_s25 = scalar_lea.hbm %s1348_s0, 4096  ;;  %p1025_p10 = scmp.lt.s32.totalorder %s1225_s8, %s1348_s0 }
  0x2b   : > { %p1022_p9 = pnand %p1021_p7, %p1020_p5  ;;  %p1026_p2 = scmp.lt.s32.totalorder %s1024_s25, %s1019_s22 }
  0x2d   : > { %p1023_p12 = pneg %p1022_p9  ;;  %p1027_p13 = por %p1026_p2, %p1025_p10 }
  0x2f   : > { %p1028_p0 = pnand %p1027_p13, %p1023_p12 }
  0x31   : > { %1031 = shalt.err (!%p1028_p0)
}
  0x32   : > { %s1032_s28 = scalar_lea.vmem %s1231_s18, 2048  ;;  %s1120_s3 = smov [#allocation2]  }
  0x33   : > { %p1033_p1 = scmp.ne.s32.totalorder %s1231_s18, %s1032_s28  ;;  %s1037_s4 = sshll.u32 %s1120_s3, 4  ;;  %s1038_s4 = int_to_ptr.vmem [resolvable:$false] %s1037_s4 }
  0x34   : > { %s1039_s5 = scalar_lea.vmem %s1038_s4, 4096  ;;  %p1040_p9 = scmp.lt.s32.totalorder %s1231_s18, %s1038_s4 }
  0x35   : > { %p1035_p6 = pnand %p1033_p1, %p1021_p7  ;;  %p1041_p3 = scmp.lt.s32.totalorder %s1039_s5, %s1032_s28 }
  0x37   : > { %p1036_p5 = pneg %p1035_p6  ;;  %p1042_p4 = por %p1041_p3, %p1040_p9 }
  0x39   : > { %p1043_p8 = pnand %p1042_p4, %p1036_p5 }
  0x3b   : > { %1046 = shalt.err (!%p1043_p8)
}
  0x3c   : > { %s1121_s6 = smov 128   ;;  %s1122_s7 = smov 8  }
  0x3d   : > { %905 = dma.hbm_to_vmem [thread:$0]  (!%p1227_p11), %s1225_s8, 2048, %s1231_s18, %s1233_s20, %s1121_s6, %s1121_s6, %s1122_s7  }
  0x3e   : > { %p1362_p1 = scmp.ne.s32.totalorder %s1357_s17, 0 }
  0x3f   : > { %s1257_s14 = sand.u32 (!%p1362_p1), 1, %s1107_s10   ;;  %p1363_p4 = scmp.ne.s32.totalorder (!%p1362_p1), %s1355_s15, 0 }
  0x40   : > { %147 = sbr.rel (%p1362_p1) target bundleno = 347 (0x15b), region = 28  ;;  %s688_s22 = sshll.u32 (!%p1362_p1), %s1257_s14, 7 }
  0x41   : > { %s150_s23 = scalar_lea.sflag (!%p1362_p1), [#allocation3], %s1257_s14  ;;  %s1261_s24 = scalar_lea.vmem (!%p1362_p1), [#allocation2], %s688_s22 }
  0x45   : > { %1090 = dma.done.wait (%p1363_p4), %s150_s23, 2048  }
  0x46   : > { %1092 = vsyncadd (%p1363_p4), %s150_s23, 4294965248  ;;  %p1364_p6 = scmp.eq.s32.totalorder %s1162_s13, 0 }
  0x48   : > { %1094 = dma.done.wait (%p1364_p6), [#allocation6], 2048   ;;  %p1365_p8 = pmov %p1364_p6 }
  0x49   : > { %v953_v0 = vld [vmem:[#allocation5 + $0x78] sm:$0xff]   ;;  %v955_v2 = vld [vmem:[#allocation5 + $0x70] sm:$0xff]   ;;  %v957_v4 = vld [vmem:[#allocation5 + $0x68] sm:$0xff]   ;;  %s690_s15 = sshll.u32 %s1257_s14, 6  ;;  %s762_s18 = sshll.u32 %s1162_s13, 10 }
  0x4a   : > { %1096 = vsyncadd (%p1365_p8), [#allocation6], 4294965248  ;;  %v954_v1 = vld [vmem:[#allocation5 + $0x38] sm:$0xff]   ;;  %810 = vmatprep.subr.bf16.mxu0 %v953_v0  ;;  %874 = vmatprep.subr.bf16.mxu1 %v953_v0  ;;  %v956_v3 = vld [vmem:[#allocation5 + $0x30] sm:$0xff]   ;;  %s1288_s17 = scalar_lea.vmem [#allocation7], %s690_s15  ;;  %s1303_s25 = scalar_lea.hbm %s1350_s2, %s762_s18 }
  0x4b   : > { %811 = vmatpush3.bf16.msra.mxu0 %v954_v1  ;;  %882 = vmatpush3.bf16.msra.mxu1 %v954_v1  ;;  %v958_v5 = vld [vmem:[#allocation5 + $0x28] sm:$0xff]   ;;  %v959_v6 = vld [vmem:[#allocation5 + $0x60] sm:$0xff]   ;;  %v961_v8 = vld [vmem:[#allocation5 + $0x58] sm:$0xff]   ;;  %s596_s8 = sshll.u32 %s1288_s17, 4  ;;  %s583_s13 = scalar_lea.sflag [#allocation4], %s1257_s14  ;;  %s1298_s8 = int_to_ptr.vmem [resolvable:$true] %s596_s8 }
  0x4c   : > { %812 = vmatprep.subr.bf16.mxu0 %v955_v2  ;;  %875 = vmatprep.subr.bf16.mxu1 %v955_v2  ;;  %v960_v7 = vld [vmem:[#allocation5 + $0x20] sm:$0xff]   ;;  %v962_v9 = vld [vmem:[#allocation5 + $0x18] sm:$0xff]   ;;  %v963_v10 = vld [vmem:[#allocation5 + $0x50] sm:$0xff]   ;;  %s1047_s26 = scalar_lea.vmem %s1298_s8, 1024  ;;  %p1366_p11 = scmp.ne.s32.totalorder %s1360_s30, 0 }
  0x4d   : > { %v971_v11 = vld [vmem:[%s1261_s24 + $0x4] ss:$8 sps:$4 sm:$0xff]   ;;  %v964_v13 = vld [vmem:[#allocation5 + $0x10] sm:$0xff]   ;;  %v969_v18 = vld [vmem:[%s1261_s24] ss:$8 sps:$4 sm:$0xff]   ;;  %p1048_p3 = scmp.ne.s32.totalorder %s1298_s8, %s1047_s26  ;;  %s1123_s27 = smov [#allocation7]  }
  0x4e   : > { %v974_v12 = vld [vmem:[%s1261_s24 + $0x44] ss:$8 sps:$4 sm:$0xff]   ;;  %437 = vmatprep.mubr.bf16.mxu0 %v971_v11  ;;  %v972_v19 = vld [vmem:[%s1261_s24 + $0x40] ss:$8 sps:$4 sm:$0xff]   ;;  %v975_v20 = vld [vmem:[%s1261_s24 + $0x14] ss:$8 sps:$4 sm:$0xff]  }
  0x4f   : > { %813 = vmatpush3.bf16.msra.mxu0 %v956_v3  ;;  %883 = vmatpush3.bf16.msra.mxu1 %v956_v3  ;;  %v965_v14 = vld [vmem:[#allocation5 + $0x48] sm:$0xff]   ;;  %v967_v16 = vld [vmem:[#allocation5 + $0x40] sm:$0xff]   ;;  %v977_v21 = vld [vmem:[%s1261_s24 + $0x54] ss:$8 sps:$4 sm:$0xff]   ;;  %p1049_p7 = pnand %p1048_p3, %p1366_p11  ;;  %s1051_s28 = sshll.u32 %s1123_s27, 4  ;;  %s1052_s28 = int_to_ptr.vmem [resolvable:$false] %s1051_s28 }
  0x50   : > { %814 = vmatprep.subr.bf16.mxu0 %v957_v4  ;;  %876 = vmatprep.subr.bf16.mxu1 %v957_v4  ;;  %v966_v15 = vld [vmem:[#allocation5 + $0x8] sm:$0xff]   ;;  %v968_v17 = vld [vmem:[#allocation5] sm:$0xff]   ;;  %v979_v22 = vld [vmem:[%s1261_s24 + $0x10] ss:$8 sps:$4 sm:$0xff]   ;;  %s1053_s3 = scalar_lea.vmem %s1052_s28, 2048  ;;  %p1054_p10 = scmp.lt.s32.totalorder %s1298_s8, %s1052_s28 }
  0x51   : > { %469 = vmatprep.mubr.bf16.mxu1 %v974_v12  ;;  %v980_v23 = vld [vmem:[%s1261_s24 + $0x50] ss:$8 sps:$4 sm:$0xff]   ;;  %v981_v24 = vld [vmem:[%s1261_s24 + $0x24] ss:$8 sps:$4 sm:$0xff]   ;;  %v985_v26 = vld [vmem:[%s1261_s24 + $0x20] ss:$8 sps:$4 sm:$0xff]   ;;  %p1050_p12 = pneg %p1049_p7  ;;  %p1055_p2 = scmp.lt.s32.totalorder %s1053_s3, %s1047_s26 }
  0x52   : > { %v983_v25 = vld [vmem:[%s1261_s24 + $0x64] ss:$8 sps:$4 sm:$0xff]   ;;  %v986_v27 = vld [vmem:[%s1261_s24 + $0x60] ss:$8 sps:$4 sm:$0xff]   ;;  %v987_v28 = vld [vmem:[%s1261_s24 + $0x34] ss:$8 sps:$4 sm:$0xff]  }
  0x53   : > { %815 = vmatpush3.bf16.msra.mxu0 %v958_v5  ;;  %884 = vmatpush3.bf16.msra.mxu1 %v958_v5  ;;  %v989_v29 = vld [vmem:[%s1261_s24 + $0x74] ss:$8 sps:$4 sm:$0xff]   ;;  %v991_v30 = vld [vmem:[%s1261_s24 + $0x30] ss:$8 sps:$4 sm:$0xff]   ;;  %p1056_p13 = por %p1055_p2, %p1054_p10 }
  0x54   : > { %816 = vmatprep.subr.bf16.mxu0 %v959_v6  ;;  %877 = vmatprep.subr.bf16.mxu1 %v959_v6  ;;  %v992_v31 = vld [vmem:[%s1261_s24 + $0x70] ss:$8 sps:$4 sm:$0xff]  }
  0x55   : > { %p1057_p0 = pnand %p1056_p13, %p1050_p12 }
  0x57   : > { %817 = vmatpush3.bf16.msra.mxu0 %v960_v7  ;;  %885 = vmatpush3.bf16.msra.mxu1 %v960_v7 }
  0x58   : > { %818 = vmatprep.subr.bf16.mxu0 %v961_v8  ;;  %878 = vmatprep.subr.bf16.mxu1 %v961_v8 }
  0x5b   : > { %819 = vmatpush3.bf16.msra.mxu0 %v962_v9  ;;  %886 = vmatpush3.bf16.msra.mxu1 %v962_v9 }
  0x5c   : > { %820 = vmatprep.subr.bf16.mxu0 %v963_v10  ;;  %879 = vmatprep.subr.bf16.mxu1 %v963_v10 }
  0x5f   : > { %821 = vmatpush3.bf16.msra.mxu0 %v964_v13  ;;  %887 = vmatpush3.bf16.msra.mxu1 %v964_v13 }
  0x60   : > { %822 = vmatprep.subr.bf16.mxu0 %v965_v14  ;;  %880 = vmatprep.subr.bf16.mxu1 %v965_v14 }
  0x63   : > { %823 = vmatpush3.bf16.msra.mxu0 %v966_v15  ;;  %888 = vmatpush3.bf16.msra.mxu1 %v966_v15 }
  0x64   : > { %824 = vmatprep.subr.bf16.mxu0 %v967_v16  ;;  %881 = vmatprep.subr.bf16.mxu1 %v967_v16 }
  0x67   : > { %825 = vmatpush3.bf16.msra.mxu0 %v968_v17  ;;  %889 = vmatpush3.bf16.msra.mxu1 %v968_v17 }
  0x6a   : > { %438 = vmatmul.mubr.bf16.vlgmr.msra.gmra.mxu0 %v969_v18  ;;  %470 = vmatmul.mubr.bf16.vlgmr.msra.gmra.mxu1 %v972_v19 }
  0x6b   : > { %445 = vmatprep.mubr.bf16.mxu0 %v975_v20  ;;  %477 = vmatprep.mubr.bf16.mxu1 %v977_v21 }
  0x72   : > { %446 = vmatmul.mubr.bf16.gmra.mxu0 %v979_v22  ;;  %478 = vmatmul.mubr.bf16.gmra.mxu1 %v980_v23 }
  0x73   : > { %453 = vmatprep.mubr.bf16.mxu0 %v981_v24  ;;  %485 = vmatprep.mubr.bf16.mxu1 %v983_v25 }
  0x7a   : > { %454 = vmatmul.mubr.bf16.gmra.mxu0 %v985_v26  ;;  %486 = vmatmul.mubr.bf16.gmra.mxu1 %v986_v27 }
  0x7b   : > { %461 = vmatprep.mubr.bf16.mxu0 %v987_v28  ;;  %493 = vmatprep.mubr.bf16.mxu1 %v989_v29 }
  0x82   : > { %462 = vmatmul.mubr.bf16.gmra.mxu0 %v991_v30  ;;  %494 = vmatmul.mubr.bf16.gmra.mxu1 %v992_v31 }
 0x12a   : > { %v826_v32 = vpop.f32.mrf.mxu0  ;;  %v850_v33 = vpop.f32.mrf.mxu1 }
 0x12c   : > { %v827_v34 = vpop.f32.mrf.mxu0  ;;  %v851_v35 = vpop.f32.mrf.mxu1 }
 0x12d   : > { %v828_v40 = vadd.f32 %v827_v34, %v826_v32  ;;  %v852_v41 = vadd.f32 %v851_v35, %v850_v33 }
 0x12e   : > { %v829_v36 = vpop.f32.mrf.mxu0  ;;  %v853_v37 = vpop.f32.mrf.mxu1 }
 0x130   : > { %v830_v38 = vpop.f32.mrf.mxu0  ;;  %v854_v39 = vpop.f32.mrf.mxu1 }
 0x131   : > { %v831_v42 = vadd.f32 %v830_v38, %v829_v36  ;;  %v855_v43 = vadd.f32 %v854_v39, %v853_v37 }
 0x132   : > { %v832_v44 = vpop.f32.mrf.mxu0  ;;  %v856_v45 = vpop.f32.mrf.mxu1 }
 0x133   : > { %v766_v46 = vpack.c.bf16 %v831_v42, %v828_v40  ;;  %v786_v47 = vpack.c.bf16 %v855_v43, %v852_v41 }
 0x134   : > { %v833_v48 = vpop.f32.mrf.mxu0  ;;  %v857_v49 = vpop.f32.mrf.mxu1 }
 0x135   : > { %767 = vst [vmem:[%s1288_s17] sm:$0xff] %v766_v46   ;;  %806 = vst [vmem:[%s1288_s17 + $0x20] sm:$0xff] %v786_v47   ;;  %v834_v54 = vadd.f32 %v833_v48, %v832_v44  ;;  %v858_v55 = vadd.f32 %v857_v49, %v856_v45 }
 0x136   : > { %v835_v50 = vpop.f32.mrf.mxu0  ;;  %v859_v51 = vpop.f32.mrf.mxu1 }
 0x138   : > { %v836_v52 = vpop.f32.mrf.mxu0  ;;  %v860_v53 = vpop.f32.mrf.mxu1 }
 0x139   : > { %v837_v56 = vadd.f32 %v836_v52, %v835_v50  ;;  %v861_v57 = vadd.f32 %v860_v53, %v859_v51 }
 0x13a   : > { %v838_v58 = vpop.f32.mrf.mxu0  ;;  %v862_v59 = vpop.f32.mrf.mxu1 }
 0x13b   : > { %v771_v60 = vpack.c.bf16 %v837_v56, %v834_v54  ;;  %v791_v61 = vpack.c.bf16 %v861_v57, %v858_v55 }
 0x13c   : > { %v839_v62 = vpop.f32.mrf.mxu0  ;;  %v863_v63 = vpop.f32.mrf.mxu1 }
 0x13d   : > { %803 = vst [vmem:[%s1288_s17 + $0x8] sm:$0xff] %v771_v60   ;;  %807 = vst [vmem:[%s1288_s17 + $0x28] sm:$0xff] %v791_v61   ;;  %v840_v4 = vadd.f32 %v839_v62, %v838_v58  ;;  %v864_v5 = vadd.f32 %v863_v63, %v862_v59 }
 0x13e   : > { %v841_v0 = vpop.f32.mrf.mxu0  ;;  %v865_v1 = vpop.f32.mrf.mxu1 }
 0x140   : > { %v842_v2 = vpop.f32.mrf.mxu0  ;;  %v866_v3 = vpop.f32.mrf.mxu1 }
 0x141   : > { %v843_v6 = vadd.f32 %v842_v2, %v841_v0  ;;  %v867_v7 = vadd.f32 %v866_v3, %v865_v1 }
 0x142   : > { %v844_v8 = vpop.f32.mrf.mxu0  ;;  %v868_v9 = vpop.f32.mrf.mxu1 }
 0x143   : > { %v776_v10 = vpack.c.bf16 %v843_v6, %v840_v4  ;;  %v796_v11 = vpack.c.bf16 %v867_v7, %v864_v5 }
 0x144   : > { %v845_v12 = vpop.f32.mrf.mxu0  ;;  %v869_v13 = vpop.f32.mrf.mxu1 }
 0x145   : > { %804 = vst [vmem:[%s1288_s17 + $0x10] sm:$0xff] %v776_v10   ;;  %808 = vst [vmem:[%s1288_s17 + $0x30] sm:$0xff] %v796_v11   ;;  %v846_v18 = vadd.f32 %v845_v12, %v844_v8  ;;  %v870_v19 = vadd.f32 %v869_v13, %v868_v9 }
 0x146   : > { %v847_v14 = vpop.f32.mrf.mxu0  ;;  %v871_v15 = vpop.f32.mrf.mxu1 }
 0x148   : > { %v848_v16 = vpop.f32.mrf.mxu0  ;;  %v872_v17 = vpop.f32.mrf.mxu1 }
 0x149   : > { %v849_v20 = vadd.f32 %v848_v16, %v847_v14  ;;  %v873_v21 = vadd.f32 %v872_v17, %v871_v15 }
 0x14b   : > { %v781_v22 = vpack.c.bf16 %v849_v20, %v846_v18  ;;  %v801_v23 = vpack.c.bf16 %v873_v21, %v870_v19 }
 0x14d   : > { %805 = vst [vmem:[%s1288_s17 + $0x18] sm:$0xff] %v781_v22   ;;  %809 = vst [vmem:[%s1288_s17 + $0x38] sm:$0xff] %v801_v23  }
 0x14e   : > { %1060 = shalt.err (!%p1057_p0)
}
 0x14f   : > { %s1061_s4 = scalar_lea.hbm %s1303_s25, 1024  ;;  %s1065_s7 = scalar_lea.hbm %s1350_s2, 2048 }
 0x150   : > { %p1062_p5 = scmp.ne.s32.totalorder %s1303_s25, %s1061_s4  ;;  %p1066_p4 = scmp.lt.s32.totalorder %s1303_s25, %s1350_s2 }
 0x151   : > { %p1067_p6 = scmp.lt.s32.totalorder %s1065_s7, %s1061_s4 }
 0x152   : > { %p1063_p9 = pnand %p1062_p5, %p1366_p11 }
 0x153   : > { %p1068_p8 = por %p1067_p6, %p1066_p4 }
 0x154   : > { %p1064_p1 = pneg %p1063_p9 }
 0x156   : > { %p1069_p3 = pnand %p1068_p8, %p1064_p1 }
 0x158   : > { %1072 = shalt.err (!%p1069_p3)
}
 0x159   : > { %s1124_s24 = smov 64   ;;  %s1125_s15 = smov 4  }
 0x15a   : > { %896 = dma.vmem_to_hbm [thread:$0]  (%p1366_p11), %s1298_s8, 1024, %s1303_s25, %s583_s13, %s1124_s24, %s1124_s24, %s1125_s15  }
 0x15b PF: > { %s611_s17 = sand.u32 1, %s1103_s9   ;;  %p1367_p7 = scmp.ne.s32.totalorder %s1356_s16, 0 }
 0x15c   : > { %p1368_p12 = scmp.ge.s32.totalorder %s1115_s12, 2  ;;  %s612_s18 = scalar_lea.sflag [#allocation4], %s611_s17 }
 0x15e   : > { %p907_p10 = pnand %p1368_p12, %p1367_p7 }
 0x160   : > { %p908_p2 = pneg %p907_p10 }
 0x162   : > { %1098 = dma.done.wait (%p908_p2), %s612_s18, 1024  }
 0x163   : > { %1100 = vsyncadd (%p908_p2), %s612_s18, 4294966272  ;;  %p16_p13 = scmp.ge.s32.totalorder %s1195_s21, 4   ;;  %s1369_s9 = smov %s1107_s10 }
 0x164   : > { %s1370_s10 = smov %s1111_s11  ;;  %s1371_s11 = smov %s1212_s29 }
 0x165   : > { %s1372_s12 = smov %s1195_s21  ;;  %18 = sbr.rel (!%p16_p13) target bundleno = 6 (0x6), region = 77 }
 0x16a   :  { %617 = vsyncpa [#allocation3], 1 }
 0x16b   :  { %619 = vsyncpa [#allocation3 + $0x1], 1 }
 0x16c   :  { %620 = vsyncpa [#allocation6], 1 }
 0x16d   :  { %621 = vsyncpa [#allocation4], 1 }
 0x16e   :  { %623 = vsyncpa [#allocation4 + $0x1], 1 }

</bundles_post_ra>
